<compile_context>
chip_gen: v7x
topology: tpu7x:2x2x1
jax: 0.10.0
libtpu: 0.0.40
codegen_flags: <defaults>
</compile_context>

<pallas_src>
import math

import jax
import jax.numpy as jnp
import numpy as np
from jax.experimental import pallas as pl
from jax.experimental.pallas import tpu as pltpu

# ----------------------------- problem sizes (small, synthetic) ----------------
B = 2          # independent relation units per call (batch / grid axis)
N = 8          # number of proposals
D_APP = 64     # appearance_feature_dim
D_K = 32       # key_feature_dim
D_G = 16       # geo_feature_dim   (N * D_G = 128 -> one lane-dense vreg row)
LN_EPS = 1e-6

# rows of the packed "vectors" operand
_ROW_BIAS_QKV = 0   # [bq*scale | bk | bv]   (width 3*D_K)
_ROW_GAMMA = 1      # [:D_K]
_ROW_BETA = 2       # [:D_K]
_ROW_B1 = 3         # [:D_K]
_ROW_B2 = 4         # [:D_K]
_ROW_BG = 5         # [0, 0] = WG bias scalar


# ----------------------------- Pallas kernel ----------------------------------
def relation_unit_kernel(app_ref, pos_ref, wqkv_ref, wg_ref, w12_ref, vec_ref,
                         out_ref):
    # app_ref : (N, D_APP)        pos_ref : (N, N*D_G)
    # wqkv_ref: (D_APP, 3*D_K)    wg_ref  : (N*D_G, N)  block-diag WG weight
    # w12_ref : (2, D_K, D_K)     vec_ref : (8, 3*D_K)  packed small vectors
    dk = w12_ref.shape[2]

    app = app_ref[...].astype(jnp.float32)
    vec = vec_ref[...]

    # Fused Q/K/V projection: one MXU push, one bias add (scale folded into Q part).
    qkv = jnp.dot(app, wqkv_ref[...], preferred_element_type=jnp.float32)
    qkv = qkv + vec[_ROW_BIAS_QKV:_ROW_BIAS_QKV + 1, :]
    w_q = qkv[:, :dk]
    w_k = qkv[:, dk:2 * dk]
    w_v = qkv[:, 2 * dk:]

    # Scaled dot product (scale already folded into w_q): contract on feature dim.
    scores = jax.lax.dot_general(
        w_q, w_k, (((1,), (1,)), ((), ())),
        preferred_element_type=jnp.float32)                    # (N, N)

    # Geometric gate: lane-dense (N, N*D_G) @ block-diag (N*D_G, N) on the MXU.
    bg = vec[_ROW_BG:_ROW_BG + 1, 0:1]                         # (1, 1) scalar gate bias
    w_g = jnp.dot(pos_ref[...].astype(jnp.float32), wg_ref[...],
                  preferred_element_type=jnp.float32) + bg     # (N, N)
    w_g = jnp.maximum(w_g, 0.0)

    # Row softmax (dim=1).  approx reciprocal -> EUP; per-row scale cancels in LN.
    logits = scores + w_g
    m = jnp.max(logits, axis=1, keepdims=True)
    e = jnp.exp(logits - m)
    denom = jnp.sum(e, axis=1, keepdims=True)
    w_mn = e * pl.reciprocal(denom, approx=True)

    # Attention output: (N, D_K)
    attention = jnp.dot(w_mn, w_v, preferred_element_type=jnp.float32)

    # LayerNorm over last dim (biased variance, eps=1e-6).
    mean = jnp.mean(attention, axis=-1, keepdims=True)
    cent = attention - mean
    var = jnp.mean(cent * cent, axis=-1, keepdims=True)
    gamma = vec[_ROW_GAMMA:_ROW_GAMMA + 1, :dk]
    beta = vec[_ROW_BETA:_ROW_BETA + 1, :dk]
    norm = cent * jax.lax.rsqrt(var + jnp.float32(LN_EPS)) * gamma + beta

    # W2(relu(W1(norm)))
    b1 = vec[_ROW_B1:_ROW_B1 + 1, :dk]
    b2 = vec[_ROW_B2:_ROW_B2 + 1, :dk]
    h = jnp.dot(norm, w12_ref[0], preferred_element_type=jnp.float32) + b1
    h = jnp.maximum(h, 0.0)
    out = jnp.dot(h, w12_ref[1], preferred_element_type=jnp.float32) + b2

    out_ref[...] = out.astype(out_ref.dtype)


# ----------------------------- parameter packing --------------------------------
def pack_params(p, n):
    """Constant-time weight prep: fuse QKV, fold softmax scale, pack small vectors,
    build the lane-dense block-diagonal WG weight for a given proposal count n."""
    d_k = p["wq"].shape[1]
    d_g = p["wg"].shape[1]
    scale = jnp.float32(1.0 / math.sqrt(d_k))

    wqkv = jnp.concatenate([p["wq"] * scale, p["wk"], p["wv"]], axis=1)     # (D_APP, 3*D_K)

    vecs = jnp.zeros((8, 3 * d_k), jnp.float32)
    vecs = vecs.at[_ROW_BIAS_QKV].set(
        jnp.concatenate([p["bq"][0] * scale, p["bk"][0], p["bv"][0]]))
    vecs = vecs.at[_ROW_GAMMA, :d_k].set(p["gamma"][0])
    vecs = vecs.at[_ROW_BETA, :d_k].set(p["beta"][0])
    vecs = vecs.at[_ROW_B1, :d_k].set(p["b1"][0])
    vecs = vecs.at[_ROW_B2, :d_k].set(p["b2"][0])
    vecs = vecs.at[_ROW_BG, 0].set(p["bg"][0, 0])

    # block-diagonal WG weight: wg_block[j*D_G + g, j] = wg[g]
    wg_block = jnp.kron(jnp.eye(n, dtype=jnp.float32), p["wg"].reshape(d_g, 1))

    w12 = jnp.stack([p["w1"], p["w2"]], axis=0)                             # (2, D_K, D_K)

    return {"wqkv": wqkv, "wg_block": wg_block, "w12": w12, "vecs": vecs}


# ----------------------------- wrapper -----------------------------------------
def relation_unit_forward(app_feature, position_embedding, packed):
    """app_feature: (B, N, D_APP); position_embedding: (B, N, N, D_G)."""
    b, n, d_app = app_feature.shape
    d_g = position_embedding.shape[-1]
    d_k = packed["w12"].shape[-1]

    # lane-dense geometric-feature layout: (B, N, N*D_G)
    pos2d = position_embedding.reshape(b, n, n * d_g)

    full = lambda shape: pl.BlockSpec(shape, lambda i: (0,) * len(shape))

    return pl.pallas_call(
        relation_unit_kernel,
        out_shape=jax.ShapeDtypeStruct((b, n, d_k), jnp.float32),
        grid=(b,),
        in_specs=[
            pl.BlockSpec((None, n, d_app), lambda i: (i, 0, 0)),       # app (per unit)
            pl.BlockSpec((None, n, n * d_g), lambda i: (i, 0, 0)),     # pos (per unit)
            full(packed["wqkv"].shape),                                # resident weights
            full(packed["wg_block"].shape),
            full(packed["w12"].shape),
            full(packed["vecs"].shape),
        ],
        out_specs=pl.BlockSpec((None, n, d_k), lambda i: (i, 0, 0)),
        compiler_params=pltpu.CompilerParams(
            dimension_semantics=("parallel",)),
    )(app_feature, pos2d, packed["wqkv"], packed["wg_block"],
      packed["w12"], packed["vecs"])


# ----------------------------- pure-JAX reference -------------------------------
def relation_unit_reference(app, pos, p):
    d_k = p["wq"].shape[1]
    w_q = app @ p["wq"] + p["bq"]
    w_k = app @ p["wk"] + p["bk"]
    w_v = app @ p["wv"] + p["bv"]
    scaled = (w_q @ w_k.T) / np.sqrt(d_k)
    w_g = jnp.maximum(jnp.einsum("ijg,g->ij", pos, p["wg"][0]) + p["bg"][0, 0], 0.0)
    w_mn = jax.nn.softmax(scaled + w_g, axis=1)
    attn = w_mn @ w_v
    mean = attn.mean(-1, keepdims=True)
    var = ((attn - mean) ** 2).mean(-1, keepdims=True)
    norm = (attn - mean) / jnp.sqrt(var + LN_EPS) * p["gamma"] + p["beta"]
    h = jnp.maximum(norm @ p["w1"] + p["b1"], 0.0)
    return h @ p["w2"] + p["b2"]


# ----------------------------- deterministic params -----------------------------
def init_params(key):
    ks = jax.random.split(key, 12)

    def lin(k, fan_in, fan_out):
        # weight stored transposed: (in, out)
        return (jax.random.normal(k, (fan_in, fan_out), jnp.float32)
                / jnp.sqrt(jnp.float32(fan_in)))

    return {
        "wq": lin(ks[0], D_APP, D_K), "bq": jax.random.normal(ks[1], (1, D_K)) * 0.02,
        "wk": lin(ks[2], D_APP, D_K), "bk": jax.random.normal(ks[3], (1, D_K)) * 0.02,
        "wv": lin(ks[4], D_APP, D_K), "bv": jax.random.normal(ks[5], (1, D_K)) * 0.02,
        # WG: Linear(D_g, 1) stored as (1, D_g) weight row + scalar bias (1,1)
        "wg": jax.random.normal(ks[6], (1, D_G)) / jnp.sqrt(jnp.float32(D_G)),
        "bg": jax.random.normal(ks[7], (1, 1)) * 0.02,
        "gamma": jnp.ones((1, D_K), jnp.float32),
        "beta": jnp.zeros((1, D_K), jnp.float32),
        "w1": lin(ks[8], D_K, D_K), "b1": jax.random.normal(ks[9], (1, D_K)) * 0.02,
        "w2": lin(ks[10], D_K, D_K), "b2": jax.random.normal(ks[11], (1, D_K)) * 0.02,
    }


if __name__ == "__main__":
    key = jax.random.PRNGKey(0)
    k_app, k_pos, k_par = jax.random.split(key, 3)

    app_feature = jax.random.normal(k_app, (B, N, D_APP), jnp.float32)
    position_embedding = jax.random.normal(k_pos, (B, N, N, D_G), jnp.float32)
    params = init_params(k_par)
    packed = pack_params(params, N)

    out = relation_unit_forward(app_feature, position_embedding, packed)
    out = jax.block_until_ready(out)

    ref = jax.vmap(relation_unit_reference, in_axes=(0, 0, None))(
        app_feature, position_embedding, params)
    np.testing.assert_allclose(np.asarray(out), np.asarray(ref), rtol=1e-4, atol=1e-4)

    print("KERNEL_OK")
</pallas_src>

<mosaic_0001>
module attributes {stable_mosaic.version = 11 : i64} {
  func.func @relation_unit_kernel(%arg0: i32, %arg1: memref<1x8x64xf32, #tpu.memory_space<vmem>>, %arg2: memref<1x8x128xf32, #tpu.memory_space<vmem>>, %arg3: memref<64x96xf32, #tpu.memory_space<vmem>>, %arg4: memref<128x8xf32, #tpu.memory_space<vmem>>, %arg5: memref<2x32x32xf32, #tpu.memory_space<vmem>>, %arg6: memref<8x96xf32, #tpu.memory_space<vmem>>, %arg7: memref<1x8x32xf32, #tpu.memory_space<vmem>>) attributes {dimension_semantics = [#tpu.dimension_semantics<parallel>], iteration_bounds = array<i64: 2>, scalar_prefetch = 0 : i64, scratch_operands = 0 : i64, tpu.core_type = #tpu.core_type<tc>, window_params = [{transform_indices = @transform_0, window_bounds = array<i64: 1, 8, 64>}, {transform_indices = @transform_1, window_bounds = array<i64: 1, 8, 128>}, {pipeline_mode = #tpu.pipeline_mode<synchronous>, transform_indices = @transform_2, window_bounds = array<i64: 64, 96>}, {pipeline_mode = #tpu.pipeline_mode<synchronous>, transform_indices = @transform_3, window_bounds = array<i64: 128, 8>}, {pipeline_mode = #tpu.pipeline_mode<synchronous>, transform_indices = @transform_4, window_bounds = array<i64: 2, 32, 32>}, {pipeline_mode = #tpu.pipeline_mode<synchronous>, transform_indices = @transform_5, window_bounds = array<i64: 8, 96>}, {transform_indices = @transform_6, window_bounds = array<i64: 1, 8, 32>}]} {
    %c0 = arith.constant 0 : index
    %c0_0 = arith.constant 0 : index
    %c0_1 = arith.constant 0 : index
    %0 = vector.load %arg1[%c0, %c0_0, %c0_1] : memref<1x8x64xf32, #tpu.memory_space<vmem>>, vector<1x8x64xf32>
    %1 = vector.shape_cast %0 : vector<1x8x64xf32> to vector<8x64xf32>
    %c0_2 = arith.constant 0 : index
    %c0_3 = arith.constant 0 : index
    %2 = vector.load %arg6[%c0_2, %c0_3] : memref<8x96xf32, #tpu.memory_space<vmem>>, vector<8x96xf32>
    %c0_4 = arith.constant 0 : index
    %c0_5 = arith.constant 0 : index
    %3 = vector.load %arg3[%c0_4, %c0_5] : memref<64x96xf32, #tpu.memory_space<vmem>>, vector<64x96xf32>
    %cst = arith.constant dense<0.000000e+00> : vector<8x96xf32>
    %4 = tpu.matmul %1, %3, %cst {dimension_numbers = #tpu.dot_dimension_numbers<[1], [0], [0], [1], [0, 0, 1, 1], [], []>} : vector<8x64xf32>, vector<64x96xf32>, vector<8x96xf32> -> vector<8x96xf32>
    %5 = vector.extract_strided_slice %2 {offsets = [0, 0], sizes = [1, 96], strides = [1, 1]} : vector<8x96xf32> to vector<1x96xf32>
    %6 = vector.broadcast %5 : vector<1x96xf32> to vector<8x96xf32>
    %7 = arith.addf %4, %6 : vector<8x96xf32>
    %8 = vector.extract_strided_slice %7 {offsets = [0, 0], sizes = [8, 32], strides = [1, 1]} : vector<8x96xf32> to vector<8x32xf32>
    %9 = vector.extract_strided_slice %7 {offsets = [0, 32], sizes = [8, 32], strides = [1, 1]} : vector<8x96xf32> to vector<8x32xf32>
    %10 = vector.extract_strided_slice %7 {offsets = [0, 64], sizes = [8, 32], strides = [1, 1]} : vector<8x96xf32> to vector<8x32xf32>
    %cst_6 = arith.constant dense<0.000000e+00> : vector<8x8xf32>
    %11 = tpu.matmul %8, %9, %cst_6 {dimension_numbers = #tpu.dot_dimension_numbers<[1], [1], [0], [0], [0, 0, 1, 0], [], []>} : vector<8x32xf32>, vector<8x32xf32>, vector<8x8xf32> -> vector<8x8xf32>
    %12 = vector.extract_strided_slice %2 {offsets = [5, 0], sizes = [1, 1], strides = [1, 1]} : vector<8x96xf32> to vector<1x1xf32>
    %c0_7 = arith.constant 0 : index
    %c0_8 = arith.constant 0 : index
    %c0_9 = arith.constant 0 : index
    %13 = vector.load %arg2[%c0_7, %c0_8, %c0_9] : memref<1x8x128xf32, #tpu.memory_space<vmem>>, vector<1x8x128xf32>
    %14 = vector.shape_cast %13 : vector<1x8x128xf32> to vector<8x128xf32>
    %c0_10 = arith.constant 0 : index
    %c0_11 = arith.constant 0 : index
    %15 = vector.load %arg4[%c0_10, %c0_11] : memref<128x8xf32, #tpu.memory_space<vmem>>, vector<128x8xf32>
    %cst_12 = arith.constant dense<0.000000e+00> : vector<8x8xf32>
    %16 = tpu.matmul %14, %15, %cst_12 {dimension_numbers = #tpu.dot_dimension_numbers<[1], [0], [0], [1], [0, 0, 1, 1], [], []>} : vector<8x128xf32>, vector<128x8xf32>, vector<8x8xf32> -> vector<8x8xf32>
    %17 = vector.broadcast %12 : vector<1x1xf32> to vector<8x8xf32>
    %18 = arith.addf %16, %17 : vector<8x8xf32>
    %cst_13 = arith.constant 0.000000e+00 : f32
    %19 = vector.broadcast %cst_13 : f32 to vector<8x8xf32>
    %20 = arith.maximumf %18, %19 : vector<8x8xf32>
    %21 = arith.addf %11, %20 : vector<8x8xf32>
    %cst_14 = arith.constant dense<0xFF800000> : vector<8xf32>
    %22 = vector.multi_reduction <maximumf>, %21, %cst_14 [1] : vector<8x8xf32> to vector<8xf32>
    %23 = vector.shape_cast %22 : vector<8xf32> to vector<8x1xf32>
    %24 = vector.broadcast %23 : vector<8x1xf32> to vector<8x8xf32>
    %25 = arith.subf %21, %24 : vector<8x8xf32>
    %26 = math.exp %25 : vector<8x8xf32>
    %cst_15 = arith.constant dense<0.000000e+00> : vector<8xf32>
    %27 = vector.multi_reduction <add>, %26, %cst_15 [1] : vector<8x8xf32> to vector<8xf32>
    %28 = vector.shape_cast %27 : vector<8xf32> to vector<8x1xf32>
    %29 = tpu.reciprocal %28 {approx = true} : vector<8x1xf32> -> vector<8x1xf32>
    %30 = vector.broadcast %29 : vector<8x1xf32> to vector<8x8xf32>
    %31 = arith.mulf %26, %30 : vector<8x8xf32>
    %cst_16 = arith.constant dense<0.000000e+00> : vector<8x32xf32>
    %32 = tpu.matmul %31, %10, %cst_16 {dimension_numbers = #tpu.dot_dimension_numbers<[1], [0], [0], [1], [0, 0, 1, 1], [], []>} : vector<8x8xf32>, vector<8x32xf32>, vector<8x32xf32> -> vector<8x32xf32>
    %cst_17 = arith.constant dense<0.000000e+00> : vector<8xf32>
    %33 = vector.multi_reduction <add>, %32, %cst_17 [1] : vector<8x32xf32> to vector<8xf32>
    %34 = vector.shape_cast %33 : vector<8xf32> to vector<8x1xf32>
    %cst_18 = arith.constant 3.200000e+01 : f32
    %35 = vector.broadcast %cst_18 : f32 to vector<8x1xf32>
    %36 = arith.divf %34, %35 : vector<8x1xf32>
    %37 = vector.broadcast %36 : vector<8x1xf32> to vector<8x32xf32>
    %38 = arith.subf %32, %37 : vector<8x32xf32>
    %39 = arith.mulf %38, %38 : vector<8x32xf32>
    %cst_19 = arith.constant dense<0.000000e+00> : vector<8xf32>
    %40 = vector.multi_reduction <add>, %39, %cst_19 [1] : vector<8x32xf32> to vector<8xf32>
    %41 = vector.shape_cast %40 : vector<8xf32> to vector<8x1xf32>
    %cst_20 = arith.constant 3.200000e+01 : f32
    %42 = vector.broadcast %cst_20 : f32 to vector<8x1xf32>
    %43 = arith.divf %41, %42 : vector<8x1xf32>
    %44 = vector.extract_strided_slice %2 {offsets = [1, 0], sizes = [1, 32], strides = [1, 1]} : vector<8x96xf32> to vector<1x32xf32>
    %45 = vector.extract_strided_slice %2 {offsets = [2, 0], sizes = [1, 32], strides = [1, 1]} : vector<8x96xf32> to vector<1x32xf32>
    %cst_21 = arith.constant 9.99999997E-7 : f32
    %46 = vector.broadcast %cst_21 : f32 to vector<8x1xf32>
    %47 = arith.addf %43, %46 : vector<8x1xf32>
    %48 = math.rsqrt %47 : vector<8x1xf32>
    %49 = vector.broadcast %48 : vector<8x1xf32> to vector<8x32xf32>
    %50 = arith.mulf %38, %49 : vector<8x32xf32>
    %51 = vector.broadcast %44 : vector<1x32xf32> to vector<8x32xf32>
    %52 = arith.mulf %50, %51 : vector<8x32xf32>
    %53 = vector.broadcast %45 : vector<1x32xf32> to vector<8x32xf32>
    %54 = arith.addf %52, %53 : vector<8x32xf32>
    %55 = vector.extract_strided_slice %2 {offsets = [3, 0], sizes = [1, 32], strides = [1, 1]} : vector<8x96xf32> to vector<1x32xf32>
    %56 = vector.extract_strided_slice %2 {offsets = [4, 0], sizes = [1, 32], strides = [1, 1]} : vector<8x96xf32> to vector<1x32xf32>
    %c0_22 = arith.constant 0 : index
    %c0_23 = arith.constant 0 : index
    %c0_24 = arith.constant 0 : index
    %57 = vector.load %arg5[%c0_22, %c0_23, %c0_24] : memref<2x32x32xf32, #tpu.memory_space<vmem>>, vector<1x32x32xf32>
    %58 = vector.shape_cast %57 : vector<1x32x32xf32> to vector<32x32xf32>
    %cst_25 = arith.constant dense<0.000000e+00> : vector<8x32xf32>
    %59 = tpu.matmul %54, %58, %cst_25 {dimension_numbers = #tpu.dot_dimension_numbers<[1], [0], [0], [1], [0, 0, 1, 1], [], []>} : vector<8x32xf32>, vector<32x32xf32>, vector<8x32xf32> -> vector<8x32xf32>
    %60 = vector.broadcast %55 : vector<1x32xf32> to vector<8x32xf32>
    %61 = arith.addf %59, %60 : vector<8x32xf32>
    %cst_26 = arith.constant 0.000000e+00 : f32
    %62 = vector.broadcast %cst_26 : f32 to vector<8x32xf32>
    %63 = arith.maximumf %61, %62 : vector<8x32xf32>
    %c1 = arith.constant 1 : index
    %c0_27 = arith.constant 0 : index
    %c0_28 = arith.constant 0 : index
    %64 = vector.load %arg5[%c1, %c0_27, %c0_28] : memref<2x32x32xf32, #tpu.memory_space<vmem>>, vector<1x32x32xf32>
    %65 = vector.shape_cast %64 : vector<1x32x32xf32> to vector<32x32xf32>
    %cst_29 = arith.constant dense<0.000000e+00> : vector<8x32xf32>
    %66 = tpu.matmul %63, %65, %cst_29 {dimension_numbers = #tpu.dot_dimension_numbers<[1], [0], [0], [1], [0, 0, 1, 1], [], []>} : vector<8x32xf32>, vector<32x32xf32>, vector<8x32xf32> -> vector<8x32xf32>
    %67 = vector.broadcast %56 : vector<1x32xf32> to vector<8x32xf32>
    %68 = arith.addf %66, %67 : vector<8x32xf32>
    %c0_30 = arith.constant 0 : index
    %c0_31 = arith.constant 0 : index
    %c0_32 = arith.constant 0 : index
    %69 = vector.load %arg7[%c0_30, %c0_31, %c0_32] : memref<1x8x32xf32, #tpu.memory_space<vmem>>, vector<1x8x32xf32>
    %70 = vector.shape_cast %69 : vector<1x8x32xf32> to vector<8x32xf32>
    %71 = vector.shape_cast %68 : vector<8x32xf32> to vector<1x8x32xf32>
    tpu.vector_store %arg7[%c0_30, %c0_31, %c0_32], %71 {strides = array<i32>} : memref<1x8x32xf32, #tpu.memory_space<vmem>>, vector<1x8x32xf32>,
    return
  }
  func.func @transform_0(%arg0: i32) -> (i32, i32, i32) {
    %c0_i32 = arith.constant 0 : i32
    %c0_i32_0 = arith.constant 0 : i32
    %c0_i32_1 = arith.constant 0 : i32
    return %arg0, %c0_i32, %c0_i32_0 : i32, i32, i32
  }
  func.func @transform_1(%arg0: i32) -> (i32, i32, i32) {
    %c0_i32 = arith.constant 0 : i32
    %c0_i32_0 = arith.constant 0 : i32
    %c0_i32_1 = arith.constant 0 : i32
    return %arg0, %c0_i32, %c0_i32_0 : i32, i32, i32
  }
  func.func @transform_2(%arg0: i32) -> (i32, i32) {
    %c0_i32 = arith.constant 0 : i32
    %c0_i32_0 = arith.constant 0 : i32
    %c0_i32_1 = arith.constant 0 : i32
    return %c0_i32, %c0_i32_0 : i32, i32
  }
  func.func @transform_3(%arg0: i32) -> (i32, i32) {
    %c0_i32 = arith.constant 0 : i32
    %c0_i32_0 = arith.constant 0 : i32
    %c0_i32_1 = arith.constant 0 : i32
    return %c0_i32, %c0_i32_0 : i32, i32
  }
  func.func @transform_4(%arg0: i32) -> (i32, i32, i32) {
    %c0_i32 = arith.constant 0 : i32
    %c0_i32_0 = arith.constant 0 : i32
    %c0_i32_1 = arith.constant 0 : i32
    %c0_i32_2 = arith.constant 0 : i32
    return %c0_i32, %c0_i32_0, %c0_i32_1 : i32, i32, i32
  }
  func.func @transform_5(%arg0: i32) -> (i32, i32) {
    %c0_i32 = arith.constant 0 : i32
    %c0_i32_0 = arith.constant 0 : i32
    %c0_i32_1 = arith.constant 0 : i32
    return %c0_i32, %c0_i32_0 : i32, i32
  }
  func.func @transform_6(%arg0: i32) -> (i32, i32, i32) {
    %c0_i32 = arith.constant 0 : i32
    %c0_i32_0 = arith.constant 0 : i32
    %c0_i32_1 = arith.constant 0 : i32
    return %arg0, %c0_i32, %c0_i32_0 : i32, i32, i32
  }
}

</mosaic_0001>

<bundles_post_ra>
// kernel: tpu_custom_call.1
= control target key start
LH: loop header
LB: loop body
LE: loop exit
PB: predicated region body
PF: predicated region fallthrough
CT: control target
= control target key end

     0   :  { %11 = vsyncpa [#allocation3], 0  ;;  %s1757_s0 = inlined_call_operand.hbm [shape: f32[2,8,64], index: 0, kind: input, shape index: {}]   ;;  %s1758_s1 = inlined_call_operand.hbm [shape: f32[2,8,128], index: 1, kind: input, shape index: {}]   ;;  %s1759_s2 = inlined_call_operand.vmem [shape: f32[64,96], index: 2, kind: input, shape index: {}]   ;;  %s1760_s3 = inlined_call_operand.vmem [shape: f32[128,8], index: 3, kind: input, shape index: {}]   ;;  %s1761_s4 = inlined_call_operand.vmem [shape: f32[2,32,32], index: 4, kind: input, shape index: {}]   ;;  %s1762_s5 = inlined_call_operand.vmem [shape: f32[8,96], index: 5, kind: input, shape index: {}]   ;;  %s1763_s6 = inlined_call_operand.hbm [shape: f32[2,8,32], index: 6, kind: output, shape index: {}]  }
   0x1   :  { %13 = vsyncpa [#allocation3 + $0x1], 0 }
   0x2   :  { %14 = vsyncpa [#allocation6], 0 }
   0x3   :  { %16 = vsyncpa [#allocation6 + $0x1], 0 }
   0x4   :  { %17 = vsyncpa [#allocation4], 0 }
   0x5   :  { %19 = vsyncpa [#allocation4 + $0x1], 0  ;;  %s1385_s21 = smov 0   ;;  %s1387_s22 = smov 0  }
   0x6   :  { %s1389_s23 = smov 0   ;;  %s1391_s24 = smov 0  }
   0x7 LB: > { %s1406_s25 = sadd.s32 4294967295, %s1340_s24   ;;  %s947_s26 = sadd.s32 4294967294, %s1340_s24   ;;  %s1340_s24 = sphi %s1391_s24, %s1782_s24   ;;  %s1336_s23 = sphi %s1389_s23, %s1781_s23   ;;  %s1332_s22 = sphi %s1387_s22, %s1780_s22   ;;  %s1328_s21 = sphi %s1385_s21, %s1779_s21  }
   0x8   : > { %s1410_s27 = sadd.s32 1, %s1340_s24   ;;  %s32_s28 = sadd.s32 1, %s1336_s23 }
   0x9   : > { %s29_s29 = ssub.s32 %s1340_s24, %s1410_s27  ;;  %p39_p0 = scmp.ne.s32.totalorder %s1336_s23, %s1332_s22 }
   0xa   : > { %p30_p1 = scmp.eq.s32.totalorder %s29_s29, 0  ;;  %p40_p2 = scmp.eq.s32.totalorder %s1340_s24, 0 }
   0xb   : > { %p45_p3 = scmp.ne.s32.totalorder %s1332_s22, %s1328_s21  ;;  %p46_p4 = scmp.eq.s32.totalorder %s1406_s25, 0 }
   0xc   : > { %s1422_s30 = scalar_select %p30_p1, %s1336_s23, %s32_s28  }
   0xd   : > { %p1424_p5 = por %p40_p2, %p39_p0  ;;  %p1428_p6 = por %p46_p4, %p45_p3 }
   0xe   : > { %p179_p7 = scmp.eq.s32.totalorder %s1406_s25, 1  ;;  %p185_p8 = scmp.eq.s32.totalorder %s947_s26, 1 }
   0xf   : > { %s1767_s8 = scalar_select %p1428_p6, 1, 0 }
  0x10   : > { %p1165_p10 = scmp.lt.s32.totalorder %s1340_s24, 2  ;;  %p1435_p11 = por %p179_p7, %p39_p0 }
  0x11   : > { %p1439_p12 = por %p185_p8, %p45_p3  ;;  %s1444_s11 = sand.u32 1, %s1336_s23  }
  0x12   : > { %s1768_s9 = scalar_select %p1435_p11, 1, 0 }
  0x13   : > { %s1769_s10 = scalar_select %p1439_p12, 1, 0 }
  0x14   : > { %s951_s12 = sshll.u32 %s1340_s24, 7  ;;  %s950_s13 = sshll.u32 %s1444_s11, 3 }
  0x15   : > { %s1453_s16 = scalar_lea.hbm %s1757_s0, %s951_s12  ;;  %s221_s17 = scalar_lea.vmem [#allocation2], %s950_s13 }
  0x16   : > { %s228_s18 = sshll.u32 %s221_s17, 4  ;;  %p1459_p13 = pnand %p1165_p10, %p1424_p5  ;;  %s1463_s18 = int_to_ptr.vmem [resolvable:$true] %s228_s18 }
  0x17   : > { %s218_s20 = scalar_lea.sflag [#allocation3], %s1444_s11  ;;  %s1210_s26 = scalar_lea.hbm %s1453_s16, 128 }
  0x18   : > { %p1211_p2 = scmp.ne.s32.totalorder %s1453_s16, %s1210_s26  ;;  %p1212_p3 = pneg %p1459_p13 }
  0x19   : > { %s1215_s7 = scalar_lea.hbm %s1757_s0, 256  ;;  %p1216_p5 = scmp.lt.u32.totalorder %s1453_s16, %s1757_s0 }
  0x1a   : > { %p1213_p4 = pnand %p1212_p3, %p1211_p2  ;;  %p1217_p8 = scmp.lt.u32.totalorder %s1215_s7, %s1210_s26 }
  0x1b   : > { %p1219_p9 = scmp.lt.u32.totalorder %s1210_s26, %s1453_s16 }
  0x1c   : > { %p1214_p7 = pneg %p1213_p4  ;;  %p1218_p10 = por %p1217_p8, %p1216_p5 }
  0x1e   : > { %p1220_p0 = por %p1219_p9, %p1218_p10 }
  0x20   : > { %p1221_p1 = pnand %p1220_p0, %p1214_p7 }
  0x22   : > { %1224 = shalt.err (!%p1221_p1)
}
  0x23   : > { %s1225_s17 = scalar_lea.vmem %s1463_s18, 128  ;;  %s1342_s28 = smov [#allocation2]  }
  0x24   : > { %p1226_p2 = scmp.ne.s32.totalorder %s1463_s18, %s1225_s17  ;;  %s1230_s29 = sshll.u32 %s1342_s28, 4  ;;  %s1231_s29 = int_to_ptr.vmem [resolvable:$false] %s1230_s29 }
  0x25   : > { %s1232_s14 = scalar_lea.vmem %s1231_s29, 256  ;;  %p1233_p11 = scmp.lt.s32.totalorder %s1463_s18, %s1231_s29 }
  0x26   : > { %p1228_p4 = pnand %p1226_p2, %p1212_p3  ;;  %p1234_p5 = scmp.lt.s32.totalorder %s1232_s14, %s1225_s17 }
  0x28   : > { %p1229_p12 = pneg %p1228_p4  ;;  %p1235_p8 = por %p1234_p5, %p1233_p11 }
  0x2a   : > { %p1236_p9 = pnand %p1235_p8, %p1229_p12 }
  0x2c   : > { %1239 = shalt.err (!%p1236_p9)
}
  0x2d   : > { %1157 = dma.hbm_to_vmem [thread:$0]  (!%p1459_p13), %s1453_s16, 128, %s1463_s18, %s218_s20  }
  0x2e   : > { %p1771_p0 = scmp.lt.s32.totalorder %s1340_s24, 3  ;;  %p1772_p1 = scmp.ge.s32.totalorder %s1340_s24, 1 }
  0x2f   : > { %s1506_s17 = scalar_lea.hbm %s1758_s1, %s951_s12  ;;  %s239_s28 = scalar_lea.vmem [#allocation5], %s950_s13 }
  0x30   : > { %p1497_p7 = pnand %p1772_p1, %p1771_p0  ;;  %s246_s29 = sshll.u32 %s239_s28, 4  ;;  %s247_s29 = int_to_ptr.vmem [resolvable:$true] %s246_s29 }
  0x31   : > { %s236_s16 = scalar_lea.sflag [#allocation6], %s1444_s11  ;;  %s1240_s18 = scalar_lea.hbm %s1506_s17, 128 }
  0x32   : > { %s1773_s26 = scalar_select %p1497_p7, 1, 0 }
  0x33   : > { %p1241_p11 = scmp.ne.s32.totalorder %s1506_s17, %s1240_s18  ;;  %s1245_s12 = scalar_lea.hbm %s1758_s1, 256 }
  0x34   : > { %p1246_p2 = scmp.lt.u32.totalorder %s1506_s17, %s1758_s1  ;;  %p1247_p4 = scmp.lt.u32.totalorder %s1245_s12, %s1240_s18 }
  0x35   : > { %p1243_p12 = pnand %p1241_p11, %p1212_p3  ;;  %p1249_p8 = scmp.lt.u32.totalorder %s1240_s18, %s1506_s17 }
  0x36   : > { %p1248_p5 = por %p1247_p4, %p1246_p2 }
  0x37   : > { %p1244_p10 = pneg %p1243_p12 }
  0x38   : > { %p1250_p9 = por %p1249_p8, %p1248_p5 }
  0x3a   : > { %p1251_p0 = pnand %p1250_p9, %p1244_p10 }
  0x3c   : > { %1254 = shalt.err (!%p1251_p0)
}
  0x3d   : > { %s1255_s11 = scalar_lea.vmem %s247_s29, 128  ;;  %s1343_s13 = smov [#allocation5]  }
  0x3e   : > { %p1256_p1 = scmp.ne.s32.totalorder %s247_s29, %s1255_s11  ;;  %s1260_s28 = sshll.u32 %s1343_s13, 4  ;;  %s1261_s28 = int_to_ptr.vmem [resolvable:$false] %s1260_s28 }
  0x3f   : > { %s1262_s20 = scalar_lea.vmem %s1261_s28, 256  ;;  %p1263_p6 = scmp.lt.s32.totalorder %s247_s29, %s1261_s28 }
  0x40   : > { %p1258_p11 = pnand %p1256_p1, %p1212_p3  ;;  %p1264_p7 = scmp.lt.s32.totalorder %s1262_s20, %s1255_s11 }
  0x42   : > { %p1259_p12 = pneg %p1258_p11  ;;  %p1265_p2 = por %p1264_p7, %p1263_p6 }
  0x44   : > { %p1266_p4 = pnand %p1265_p2, %p1259_p12 }
  0x46   : > { %1269 = shalt.err (!%p1266_p4)
}
  0x47   : > { %1160 = dma.hbm_to_vmem [thread:$0]  (!%p1459_p13), %s1506_s17, 128, %s247_s29, %s236_s16  }
  0x48   : > { %p1774_p10 = scmp.ne.s32.totalorder %s1773_s26, 0 }
  0x49   : > { %s1533_s18 = sand.u32 (!%p1774_p10), 1, %s1332_s22   ;;  %p1775_p6 = scmp.ne.s32.totalorder (!%p1774_p10), %s1767_s8, 0 }
  0x4a   : > { %255 = sbr.rel (%p1774_p10) target bundleno = 1931 (0x78b), region = 44  ;;  %s1536_s14 = sshll.u32 (!%p1774_p10), %s1533_s18, 3 }
  0x4b   : > { %s258_s12 = scalar_lea.sflag (!%p1774_p10), [#allocation3], %s1533_s18  ;;  %s261_s7 = scalar_lea.vmem (!%p1774_p10), [#allocation2], %s1536_s14 }
  0x51   : > { %1315 = dma.done.wait (%p1775_p6), %s258_s12, 128  }
  0x52   : > { %1317 = vsyncadd (%p1775_p6), %s258_s12, 4294967168  ;;  %s267_s19 = scalar_lea.sflag [#allocation6], %s1533_s18  ;;  %s270_s26 = scalar_lea.vmem [#allocation5], %s1536_s14 }
  0x53   : > { %1319 = dma.done.wait (%p1775_p6), %s267_s19, 128  }
  0x54   : > { %1321 = vsyncadd (%p1775_p6), %s267_s19, 4294967168  ;;  %v1344_v0 = vmov 0.0|0.0   ;;  %vm1345_vm0 = vmmov 0   ;;  %v1346_v1 = vmov 0.0   ;;  %v306_v2 = vld [vmem:[%s1759_s2] sm:$0xff]  ;;  %v307_v3 = vld [vmem:[%s1759_s2 + $0x8] sm:$0xff]  ;;  %v314_v40 = vlaneseq }
  0x55   : > { %1098 = vmatprep.subr.bf16.mxu0 %v1344_v0  ;;  %1028 = vmatprep.mubr.msk.f32.mxu0 %vm1345_vm0, %v1346_v1  ;;  %v308_v4 = vld [vmem:[%s1759_s2 + $0x10] sm:$0xff]  ;;  %v1099_v5 = vpack.c.bf16 %v307_v3, %v306_v2  ;;  %v309_v6 = vld [vmem:[%s1759_s2 + $0x18] sm:$0xff]  ;;  %v310_v8 = vld [vmem:[%s1759_s2 + $0x20] sm:$0xff]  ;;  %vm318_vm1 = vcmask 523264   ;;  %vm488_vm2 = vcmask 261120   ;;  %vm563_vm3 = vcmask 64512  }
  0x56   : > { %1110 = vmatprep.subr.bf16.mxu1 %v1344_v0  ;;  %1063 = vmatprep.mubr.msk.f32.mxu1 %vm1345_vm0, %v1346_v1  ;;  %v1102_v7 = vpack.c.bf16 %v309_v6, %v308_v4  ;;  %v311_v9 = vld [vmem:[%s1759_s2 + $0x28] sm:$0xff]  ;;  %v312_v11 = vld [vmem:[%s1759_s2 + $0x30] sm:$0xff]  ;;  %v313_v12 = vld [vmem:[%s1759_s2 + $0x38] sm:$0xff]  ;;  %v1648_v41 = vshrl.u32 %v314_v40, 7  ;;  %s1348_s15 = smov 64   ;;  %s969_s20 = sshll.u32 %s1406_s25, 7 }
  0x57   : > { %1100 = vmatpush3.bf16.msra.mxu0 %v1099_v5  ;;  %v1105_v10 = vpack.c.bf16 %v311_v9, %v310_v8  ;;  %v1108_v13 = vpack.c.bf16 %v313_v12, %v312_v11  ;;  %v304_v14 = vld [vmem:[%s261_s7] sm:$0xff]  ;;  %v395_v17 = vld [vmem:[%s1760_s3 + $0x10] sm:$0xff]  ;;  %v396_v19 = vld [vmem:[%s1760_s3 + $0x18] sm:$0xff]  ;;  %s303_s12 = scalar_lea.vmem [#allocation7], %s1536_s14  ;;  %s1712_s29 = scalar_lea.hbm %s1763_s6, %s969_s20 }
  0x58   : > { %1101 = vmatprep.subr.bf16.mxu0 %v1344_v0  ;;  %v393_v15 = vld [vmem:[%s1760_s3] sm:$0xff]  ;;  %v394_v16 = vld [vmem:[%s1760_s3 + $0x8] sm:$0xff]  ;;  %v1114_v20 = vpack.c.bf16 %v396_v19, %v395_v17  ;;  %v399_v24 = vld [vmem:[%s1760_s3 + $0x30] sm:$0xff]  ;;  %v316_v43 = vsub.s32 0, %v1648_v41  ;;  %s854_s19 = sshll.u32 %s303_s12, 4  ;;  %s841_s16 = scalar_lea.sflag [#allocation4], %s1533_s18  ;;  %s1714_s19 = int_to_ptr.vmem [resolvable:$true] %s854_s19 }
  0x59   : > { %v1111_v18 = vpack.c.bf16 %v394_v16, %v393_v15  ;;  %v397_v21 = vld [vmem:[%s1760_s3 + $0x20] sm:$0xff]  ;;  %v398_v22 = vld [vmem:[%s1760_s3 + $0x28] sm:$0xff]  ;;  %v400_v25 = vld [vmem:[%s1760_s3 + $0x38] sm:$0xff]  ;;  %p1776_p3 = scmp.ne.s32.totalorder %s1768_s9, 0  ;;  %s1349_s25 = smov [#allocation7]  }
  0x5a   : > { %v1117_v23 = vpack.c.bf16 %v398_v22, %v397_v21  ;;  %v1120_v26 = vpack.c.bf16 %v400_v25, %v399_v24  ;;  %v401_v27 = vld [vmem:[%s1760_s3 + $0x40] sm:$0xff]  ;;  %v402_v28 = vld [vmem:[%s1760_s3 + $0x48] sm:$0xff]  ;;  %v403_v30 = vld [vmem:[%s1760_s3 + $0x50] sm:$0xff]  ;;  %v672_v24 = vsub.s32 2, %v1648_v41  ;;  %s1274_s14 = sshll.u32 %s1349_s25, 4  ;;  %s1275_s14 = int_to_ptr.vmem [resolvable:$false] %s1274_s14 }
  0x5b   : > { %1103 = vmatpush3.bf16.msra.mxu0 %v1102_v7  ;;  %1112 = vmatpush3.bf16.msra.mxu1 %v1111_v18  ;;  %v1123_v29 = vpack.c.bf16 %v402_v28, %v401_v27  ;;  %v404_v31 = vld [vmem:[%s1760_s3 + $0x58] sm:$0xff]  ;;  %v405_v33 = vld [vmem:[%s1760_s3 + $0x60] sm:$0xff]  ;;  %v406_v34 = vld [vmem:[%s1760_s3 + $0x68] sm:$0xff]  ;;  %p1277_p8 = scmp.lt.s32.totalorder %s1714_s19, %s1275_s14 }
  0x5c   : > { %1104 = vmatprep.subr.bf16.mxu0 %v1344_v0  ;;  %1113 = vmatprep.subr.bf16.mxu1 %v1344_v0  ;;  %v1126_v32 = vpack.c.bf16 %v404_v31, %v403_v30  ;;  %v1129_v35 = vpack.c.bf16 %v406_v34, %v405_v33  ;;  %v407_v36 = vld [vmem:[%s1760_s3 + $0x70] sm:$0xff]  ;;  %v408_v37 = vld [vmem:[%s1760_s3 + $0x78] sm:$0xff]  ;;  %v1653_v42 = vld [vmem:[%s1762_s5] sm:$0xff] }
  0x5d   : > { %v1132_v38 = vpack.c.bf16 %v408_v37, %v407_v36  ;;  %v392_v39 = vld [vmem:[%s270_s26] sm:$0xff]  ;;  %v410_v44 = vrot.slane %v1653_v42, 5  ;;  %v317_v45 = vrot.slane %v1653_v42, %v316_v43  ;;  %s1347_s26 = smov 96   ;;  %v676_v15 = vld [vmem:[%s1761_s4 + $0x8] sm:$0xff]  ;;  %v673_v28 = vrot.slane %v1653_v42, %v672_v24 }
  0x5e   : > { %v677_v17 = vld [vmem:[%s1761_s4 + $0x10] sm:$0xff]  ;;  %v678_v18 = vld [vmem:[%s1761_s4 + $0x18] sm:$0xff]  ;;  %v964_v30 = vld [vmem:[%s1761_s4 + $0x28] sm:$0xff]  ;;  %v681_v37 = vsub.s32 3, %v1648_v41 }
  0x5f   : > { %1106 = vmatpush3.bf16.msra.mxu0 %v1105_v10  ;;  %1115 = vmatpush3.bf16.msra.mxu1 %v1114_v20  ;;  %1146 = vpush %v410_v44  ;;  %v1138_v19 = vpack.c.bf16 %v678_v18, %v677_v17  ;;  %v965_v34 = vld [vmem:[%s1761_s4 + $0x30] sm:$0xff] }
  0x60   : > { %1107 = vmatprep.subr.bf16.mxu0 %v1344_v0  ;;  %1116 = vmatprep.subr.bf16.mxu1 %v1344_v0 }
  0x63   : > { %1109 = vmatpush3.bf16.msra.mxu0 %v1108_v13  ;;  %1118 = vmatpush3.bf16.msra.mxu1 %v1117_v23  ;;  %v667_v23 = vsub.s32 1, %v1648_v41 }
  0x64   : > { %1071 = vmatprep.subr.mxu0 %v1346_v1  ;;  %1119 = vmatprep.subr.bf16.mxu1 %v1344_v0 }
  0x65   : > { %v668_v25 = vrot.slane %v1653_v42, %v667_v23 }
  0x66   : > { %1029 = vmatmul.mubr.msk.f32.vlgmr.msra.gmra.mrb[0].mxu0 %vm318_vm1, %v304_v14  ;;  %v675_v14 = vld [vmem:[%s1761_s4] sm:$0xff] }
  0x67   : > { %1073 = vmatprep.mubr.msk.f32.mxu0 %vm1345_vm0, %v1346_v1  ;;  %1121 = vmatpush3.bf16.msra.mxu1 %v1120_v26  ;;  %v1135_v16 = vpack.c.bf16 %v676_v15, %v675_v14 }
  0x68   : > { %1122 = vmatprep.subr.bf16.mxu1 %v1344_v0 }
  0x6b   : > { %1124 = vmatpush3.bf16.msra.mxu1 %v1123_v29  ;;  %v963_v29 = vld [vmem:[%s1761_s4 + $0x20] sm:$0xff] }
  0x6c   : > { %1125 = vmatprep.subr.bf16.mxu1 %v1344_v0 }
  0x6f   : > { %1127 = vmatpush3.bf16.msra.mxu1 %v1126_v32  ;;  %v1141_v32 = vpack.c.bf16 %v964_v30, %v963_v29 }
  0x70   : > { %1128 = vmatprep.subr.bf16.mxu1 %v1344_v0 }
  0x73   : > { %1130 = vmatpush3.bf16.msra.mxu1 %v1129_v35  ;;  %v966_v35 = vld [vmem:[%s1761_s4 + $0x38] sm:$0xff] }
  0x74   : > { %1131 = vmatprep.subr.bf16.mxu1 %v1344_v0  ;;  %v1144_v36 = vpack.c.bf16 %v966_v35, %v965_v34 }
  0x77   : > { %1133 = vmatpush3.bf16.msra.mxu1 %v1132_v38  ;;  %v682_v38 = vrot.slane %v1653_v42, %v681_v37 }
  0x78   : > { %1066 = vmatprep.subr.mxu1 %v1346_v1 }
  0x7a   : > { %1064 = vmatmul.mubr.f32.vlgmr.msra.gmra.mrb[0].mxu1 %v392_v39 }
  0x7b   : > { %1068 = vmatprep.mubr.msk.f32.mxu1 %vm1345_vm0, %v1346_v1 }
  0x90   : > { %s1147_s8 = spop %1146 }
  0x91   : > { %v412_v52 = vstv %s1147_s8  ;;  %s1276_s8 = scalar_lea.vmem %s1275_s14, 256 }
 0x139   : > { %v388_v46 = vpop.f32.mrb[0].mxu0 }
 0x13a   : > { %v389_v47 = vadd.f32 %v388_v46, %v317_v45  ;;  %v1030_v48 = vpop.f32.mrb[1].mxu0 }
 0x13c   : > { %486 = vrot.lane.b32.xlu0 %v389_v47, %s1347_s26  ;;  %s1270_s26 = scalar_lea.vmem %s1714_s19, 128 }
 0x13d   : > { %p1271_p13 = scmp.ne.s32.totalorder %s1714_s19, %s1270_s26  ;;  %p1278_p9 = scmp.lt.s32.totalorder %s1276_s8, %s1270_s26 }
 0x13f   : > { %p1272_p7 = pnand %p1271_p13, %p1776_p3  ;;  %p1279_p0 = por %p1278_p9, %p1277_p8 }
 0x141   : > { %p1273_p5 = pneg %p1272_p7 }
 0x143   : > { %p1280_p1 = pnand %p1279_p0, %p1273_p5 }
 0x14d   : > { %v480_v50 = vpop.f32.mrb[0].mxu1 }
 0x14e   : > { %v1065_v51 = vpop.f32.mrb[1].mxu1  ;;  %v481_v53 = vadd.f32 %v480_v50, %v412_v52 }
 0x150   : > { %v484_v54 = vmax.f32 %v481_v53, 0.0 }
 0x1ae   : > { %v487_v49 = vpop.permute.xlu0 %486 }
 0x1af   : > { %1067 = vmatpush3.xpose.msk.msra.mxu1 %vm488_vm2, %v487_v49 }
 0x1b2   : > { %1069 = vmatmul.mubr.msk.f32.vlgmr.msra.gmra.mrb[2].mxu1 %vm488_vm2, %v389_v47 }
 0x285   : > { %v559_v55 = vpop.f32.mrb[2].mxu1 }
 0x286   : > { %v560_v56 = vadd.f32 %v559_v55, %v484_v54  ;;  %v1070_v57 = vpop.f32.mrb[3].mxu1 }
 0x288   : > { %v564_v58 = vsel %vm563_vm3, %v560_v56, -inf }
 0x289   : > { %565 = vmax.xlane.f32.xlu0 %v564_v58 }
 0x316   : > { %v566_v59 = vpop.xlane.xlu0 %565 }
 0x317   : > { %v567_v60 = vsub.f32 %v560_v56, %v566_v59 }
 0x319   : > { %v568_v61 = vmul.f32 1.442695, %v567_v60 }
 0x31b   : > { %1204 = vpow2.f32 %v568_v61 }
 0x325   : > { %v1205_v62 = vpop.eup %1204 }
 0x326   : > { %v570_v63 = vsel %vm563_vm3, %v1205_v62, 0.0 }
 0x327   : > { %571 = vadd.xlane.f32.xlu1 %v570_v63 }
 0x338   : > { %575 = vrot.lane.b32.xlu1 %v389_v47, %s1348_s15 }
 0x3b4   : > { %v572_v2 = vpop.xlane.xlu1 %571 }
 0x3b5   : > { %1206 = vrcp.f32 %v572_v2 }
 0x3b8   : > { %v576_v3 = vpop.permute.xlu1 %575 }
 0x3b9   : > { %1072 = vmatpush3.msra.mxu0 %v576_v3 }
 0x3ba   : > { %1134 = vmatprep.subr.bf16.mxu0 %v1344_v0 }
 0x3bf   : > { %v1207_v4 = vpop.eup %1206 }
 0x3c0   : > { %v574_v5 = vmul.f32 %v1207_v4, %v1205_v62 }
 0x3c2   : > { %1074 = vmatmul.mubr.msk.f32.vlgmr.msra.gmra.mrb[2].mxu0 %vm563_vm3, %v574_v5 }
 0x3c3   : > { %1084 = vmatprep.mubr.msk.f32.mxu0 %vm1345_vm0, %v1346_v1  ;;  %1136 = vmatpush3.bf16.msra.mxu0 %v1135_v16 }
 0x3c4   : > { %1137 = vmatprep.subr.bf16.mxu0 %v1344_v0 }
 0x3c7   : > { %1139 = vmatpush3.bf16.msra.mxu0 %v1138_v19 }
 0x3c8   : > { %1140 = vmatprep.subr.bf16.mxu0 %v1344_v0 }
 0x495   : > { %v647_v6 = vpop.f32.mrb[2].mxu0 }
 0x496   : > { %v1075_v7 = vpop.f32.mrb[3].mxu0  ;;  %v651_v8 = vsel %vm488_vm2, %v647_v6, 0.0 }
 0x497   : > { %652 = vadd.xlane.f32.xlu1 %v651_v8 }
 0x524   : > { %v653_v9 = vpop.xlane.xlu1 %652 }
 0x525   : > { %v655_v10 = vmul.f32 0.03125, %v653_v9 }
 0x527   : > { %v656_v11 = vsub.f32 %v647_v6, %v655_v10 }
 0x529   : > { %v657_v12 = vmul.f32 %v656_v11, %v656_v11 }
 0x52b   : > { %v658_v13 = vsel %vm488_vm2, %v657_v12, 0.0 }
 0x52c   : > { %659 = vadd.xlane.f32.xlu0 %v658_v13 }
 0x5b9   : > { %v660_v20 = vpop.xlane.xlu0 %659 }
 0x5ba   : > { %v661_v21 = vmul.f32 0.03125, %v660_v20 }
 0x5bc   : > { %v662_v22 = vadd.f32 1e-06, %v661_v21 }
 0x5be   : > { %1208 = vrsqrt.f32 %v662_v22 }
 0x5c8   : > { %v1209_v26 = vpop.eup %1208 }
 0x5c9   : > { %v664_v27 = vmul.f32 %v1209_v26, %v656_v11 }
 0x5cb   : > { %v669_v31 = vmul.f32 %v668_v25, %v664_v27 }
 0x5cd   : > { %v674_v33 = vadd.f32 %v673_v28, %v669_v31 }
 0x5cf   : > { %1085 = vmatmul.mubr.msk.f32.vlgmr.msra.gmra.mrb[4].mxu0 %vm488_vm2, %v674_v33 }
 0x5d0   : > { %1142 = vmatpush3.bf16.msra.mxu0 %v1141_v32  ;;  %1095 = vmatprep.mubr.msk.f32.mxu0 %vm1345_vm0, %v1346_v1 }
 0x5d1   : > { %1143 = vmatprep.subr.bf16.mxu0 %v1344_v0  ;;  %v764_v0 = vsub.s32 4, %v1648_v41 }
 0x5d3   : > { %v765_v44 = vrot.slane %v1653_v42, %v764_v0 }
 0x5d4   : > { %1145 = vmatpush3.bf16.msra.mxu0 %v1144_v36 }
 0x6a2   : > { %v752_v39 = vpop.f32.mrb[4].mxu0 }
 0x6a3   : > { %v753_v1 = vadd.f32 %v752_v39, %v682_v38  ;;  %v1086_v40 = vpop.f32.mrb[5].mxu0 }
 0x6a5   : > { %v756_v43 = vmax.f32 %v753_v1, 0.0 }
 0x6a7   : > { %1096 = vmatmul.mubr.msk.f32.vlgmr.msra.gmra.mrb[6].mxu0 %vm488_vm2, %v756_v43 }
 0x77a   : > { %v835_v45 = vpop.f32.mrb[6].mxu0 }
 0x77b   : > { %v836_v46 = vadd.f32 %v835_v45, %v765_v44  ;;  %v1097_v47 = vpop.f32.mrb[7].mxu0 }
 0x77d   : > { %839 = vst.msk [vmem:[%s303_s12] sm:$0xff] %vm488_vm2, %v836_v46 }
 0x77e   : > { %1283 = shalt.err (!%p1280_p1)
}
 0x77f   : > { %s1284_s18 = scalar_lea.hbm %s1712_s29, 128  ;;  %s1288_s13 = scalar_lea.hbm %s1763_s6, 256 }
 0x780   : > { %p1285_p11 = scmp.ne.s32.totalorder %s1712_s29, %s1284_s18  ;;  %p1289_p4 = scmp.lt.u32.totalorder %s1712_s29, %s1763_s6 }
 0x781   : > { %p1290_p10 = scmp.lt.u32.totalorder %s1288_s13, %s1284_s18  ;;  %p1292_p13 = scmp.lt.u32.totalorder %s1284_s18, %s1712_s29 }
 0x782   : > { %p1286_p12 = pnand %p1285_p11, %p1776_p3 }
 0x783   : > { %p1291_p6 = por %p1290_p10, %p1289_p4 }
 0x784   : > { %p1287_p2 = pneg %p1286_p12 }
 0x785   : > { %p1293_p7 = por %p1292_p13, %p1291_p6 }
 0x787   : > { %p1294_p5 = pnand %p1293_p7, %p1287_p2 }
 0x789   : > { %1297 = shalt.err (!%p1294_p5)
}
 0x78a   : > { %1152 = dma.vmem_to_hbm [thread:$0]  (%p1776_p3), %s1714_s19, 128, %s1712_s29, %s841_s16  }
 0x78b PF: > { %s866_s12 = sand.u32 1, %s1328_s21   ;;  %p1777_p8 = scmp.ne.s32.totalorder %s1769_s10, 0 }
 0x78c   : > { %p1778_p9 = scmp.ge.s32.totalorder %s1340_s24, 2  ;;  %s867_s7 = scalar_lea.sflag [#allocation4], %s866_s12 }
 0x78e   : > { %p1162_p0 = pnand %p1778_p9, %p1777_p8 }
 0x790   : > { %1323 = dma.done.wait (!%p1162_p0), %s867_s7, 128  }
 0x791   : > { %1325 = vsyncadd (!%p1162_p0), %s867_s7, 4294967168  ;;  %p22_p1 = scmp.ge.s32.totalorder %s1410_s27, 4   ;;  %s1779_s21 = smov %s1332_s22 }
 0x792   : > { %s1780_s22 = smov %s1336_s23  ;;  %s1781_s23 = smov %s1422_s30 }
 0x793   : > { %s1782_s24 = smov %s1410_s27  ;;  %24 = sbr.rel (!%p22_p1) target bundleno = 7 (0x7), region = 103 }
 0x79a   :  { %872 = vsyncpa [#allocation3], 1 }
 0x79b   :  { %874 = vsyncpa [#allocation3 + $0x1], 1 }
 0x79c   :  { %875 = vsyncpa [#allocation6], 1 }
 0x79d   :  { %877 = vsyncpa [#allocation6 + $0x1], 1 }
 0x79e   :  { %878 = vsyncpa [#allocation4], 1 }
 0x79f   :  { %880 = vsyncpa [#allocation4 + $0x1], 1 }

</bundles_post_ra>
